<compile_context>
chip_gen: v7x
topology: tpu7x:2x2x1
jax: 0.10.0
libtpu: 0.0.40
codegen_flags: <defaults>
</compile_context>

<pallas_src>
import jax
import jax.numpy as jnp
from jax.experimental import pallas as pl
from jax.experimental.pallas import tpu as pltpu


def _round_up(n, m):
    return (n + m - 1) // m * m


def _f32(v):
    return v if v.dtype == jnp.float32 else v.astype(jnp.float32)


def mlp_kernel(x_ref, w1_ref, b1_ref, w2_ref, b2_ref, o_ref):
    # Blocks (transposed layout, batch on lanes):
    #   x_ref : (in_dim, TILE_B)   w1_ref: (hid, in_dim)   b1_ref: (hid, 1)
    #   w2_ref: (out_dim, hid)     b2_ref: (out_dim, 1)    o_ref : (out_dim, TILE_B)
    x = _f32(x_ref[...])
    w1 = _f32(w1_ref[...])
    w2 = _f32(w2_ref[...])
    tb = x.shape[-1]

    # Layer 1: h = tanh(W1^T x + b1) -- unrolled rank-1 VPU accumulation (K=8),
    # bias folded into the accumulator init.
    h = jnp.broadcast_to(_f32(b1_ref[...]), (w1.shape[0], tb))
    for k in range(w1.shape[1]):
        h = h + w1[:, k:k + 1] * x[k:k + 1, :]
    h = jnp.tanh(h)

    # Layer 2: y = tanh(W2^T h + b2) -- unrolled rank-1 VPU accumulation (K=4).
    y = jnp.broadcast_to(_f32(b2_ref[...]), (w2.shape[0], tb))
    for k in range(w2.shape[1]):
        y = y + w2[:, k:k + 1] * h[k:k + 1, :]
    o_ref[...] = jnp.tanh(y).astype(o_ref.dtype)


def simple_mlp(x, w1, b1, w2, b2, *, tile_b=1024):
    """SimpleMLP forward.  x: [B, 8], w1: [8, 4], b1: [4], w2: [4, 2], b2: [2]."""
    B, in_dim = x.shape
    hid = w1.shape[1]
    out_dim = w2.shape[1]

    # Batch tile: multiple of 128 lanes, no bigger than the (padded) batch.
    tile_b = max(128, _round_up(min(tile_b, max(B, 1)), 128))
    n_tiles = pl.cdiv(B, tile_b)
    b_pad = n_tiles * tile_b

    # Lane-dense layout: batch on the last (lane) axis; pad batch to the tile.
    xT = x.T                                   # (in_dim, B)
    if b_pad != B:
        xT = jnp.pad(xT, ((0, 0), (0, b_pad - B)))
    w1T = w1.T                                 # (hid, in_dim)
    w2T = w2.T                                 # (out_dim, hid)
    b1c = b1.reshape(hid, 1)
    b2c = b2.reshape(out_dim, 1)

    outT = pl.pallas_call(
        mlp_kernel,
        out_shape=jax.ShapeDtypeStruct((out_dim, b_pad), x.dtype),
        grid_spec=pltpu.PrefetchScalarGridSpec(
            num_scalar_prefetch=0,
            grid=(n_tiles,),
            in_specs=[
                pl.BlockSpec((in_dim, tile_b), lambda i: (0, i)),  # streamed activations
                pl.BlockSpec((hid, in_dim), lambda i: (0, 0)),     # resident weights
                pl.BlockSpec((hid, 1), lambda i: (0, 0)),
                pl.BlockSpec((out_dim, hid), lambda i: (0, 0)),
                pl.BlockSpec((out_dim, 1), lambda i: (0, 0)),
            ],
            out_specs=pl.BlockSpec((out_dim, tile_b), lambda i: (0, i)),
        ),
        compiler_params=pltpu.CompilerParams(
            dimension_semantics=("parallel",),  # megacore-shardable batch axis (v7x)
        ),
    )(xT, w1T, b1c, w2T, b2c)

    return outT[:, :B].T                        # back to [B, out_dim]


def mlp_reference(x, w1, b1, w2, b2):
    # Plain-JAX reference with exact-f32 matmuls.
    h = jnp.tanh(jnp.dot(x, w1, precision=jax.lax.Precision.HIGHEST) + b1)
    return jnp.tanh(jnp.dot(h, w2, precision=jax.lax.Precision.HIGHEST) + b2)


def init_params(key):
    # Mirror torch.nn.Linear default init: U(-1/sqrt(fan_in), 1/sqrt(fan_in)).
    k1, k2, k3, k4 = jax.random.split(key, 4)
    bound1 = 1.0 / jnp.sqrt(8.0)
    bound2 = 1.0 / jnp.sqrt(4.0)
    w1 = jax.random.uniform(k1, (8, 4), jnp.float32, -bound1, bound1)
    b1 = jax.random.uniform(k2, (4,), jnp.float32, -bound1, bound1)
    w2 = jax.random.uniform(k3, (4, 2), jnp.float32, -bound2, bound2)
    b2 = jax.random.uniform(k4, (2,), jnp.float32, -bound2, bound2)
    return w1, b1, w2, b2


if __name__ == "__main__":
    key = jax.random.PRNGKey(0)
    kx, kx2, kp = jax.random.split(key, 3)
    w1, b1, w2, b2 = init_params(kp)

    # Small demo batch (module spec: features 8 -> 4 -> 2).
    B = 2
    x = jax.random.normal(kx, (B, 8), jnp.float32)
    out = simple_mlp(x, w1, b1, w2, b2)
    jax.block_until_ready(out)
    ref = mlp_reference(x, w1, b1, w2, b2)
    assert out.shape == (B, 2)
    assert jnp.allclose(out, ref, atol=1e-5, rtol=1e-5)

    # Exercise the tiled / multi-grid-step path (B not a multiple of 128).
    B2 = 300
    x2 = jax.random.normal(kx2, (B2, 8), jnp.float32)
    out2 = simple_mlp(x2, w1, b1, w2, b2, tile_b=128)
    jax.block_until_ready(out2)
    ref2 = mlp_reference(x2, w1, b1, w2, b2)
    assert out2.shape == (B2, 2)
    assert jnp.allclose(out2, ref2, atol=1e-5, rtol=1e-5)

    print("KERNEL_OK")
</pallas_src>

<mosaic_0001>
module attributes {stable_mosaic.version = 11 : i64} {
  func.func @mlp_kernel(%arg0: i32, %arg1: memref<8x128xf32, #tpu.memory_space<vmem>>, %arg2: memref<4x8xf32, #tpu.memory_space<vmem>>, %arg3: memref<4x1xf32, #tpu.memory_space<vmem>>, %arg4: memref<2x4xf32, #tpu.memory_space<vmem>>, %arg5: memref<2x1xf32, #tpu.memory_space<vmem>>, %arg6: memref<2x128xf32, #tpu.memory_space<vmem>>) attributes {dimension_semantics = [#tpu.dimension_semantics<parallel>], iteration_bounds = array<i64: 1>, scalar_prefetch = 0 : i64, scratch_operands = 0 : i64, tpu.core_type = #tpu.core_type<tc>, window_params = [{transform_indices = @transform_0, window_bounds = array<i64: 8, 128>}, {pipeline_mode = #tpu.pipeline_mode<synchronous>, transform_indices = @transform_1, window_bounds = array<i64: 4, 8>}, {pipeline_mode = #tpu.pipeline_mode<synchronous>, transform_indices = @transform_2, window_bounds = array<i64: 4, 1>}, {pipeline_mode = #tpu.pipeline_mode<synchronous>, transform_indices = @transform_3, window_bounds = array<i64: 2, 4>}, {pipeline_mode = #tpu.pipeline_mode<synchronous>, transform_indices = @transform_4, window_bounds = array<i64: 2, 1>}, {transform_indices = @transform_5, window_bounds = array<i64: 2, 128>}]} {
    %c0 = arith.constant 0 : index
    %c0_0 = arith.constant 0 : index
    %0 = vector.load %arg1[%c0, %c0_0] : memref<8x128xf32, #tpu.memory_space<vmem>>, vector<8x128xf32>
    %c0_1 = arith.constant 0 : index
    %c0_2 = arith.constant 0 : index
    %1 = vector.load %arg2[%c0_1, %c0_2] : memref<4x8xf32, #tpu.memory_space<vmem>>, vector<4x8xf32>
    %c0_3 = arith.constant 0 : index
    %c0_4 = arith.constant 0 : index
    %2 = vector.load %arg4[%c0_3, %c0_4] : memref<2x4xf32, #tpu.memory_space<vmem>>, vector<2x4xf32>
    %c0_5 = arith.constant 0 : index
    %c0_6 = arith.constant 0 : index
    %3 = vector.load %arg3[%c0_5, %c0_6] : memref<4x1xf32, #tpu.memory_space<vmem>>, vector<4x1xf32>
    %4 = vector.shape_cast %3 : vector<4x1xf32> to vector<4x1xf32>
    %5 = vector.broadcast %4 : vector<4x1xf32> to vector<4x128xf32>
    %6 = vector.extract_strided_slice %1 {offsets = [0, 0], sizes = [4, 1], strides = [1, 1]} : vector<4x8xf32> to vector<4x1xf32>
    %7 = vector.extract_strided_slice %0 {offsets = [0, 0], sizes = [1, 128], strides = [1, 1]} : vector<8x128xf32> to vector<1x128xf32>
    %8 = vector.broadcast %6 : vector<4x1xf32> to vector<4x128xf32>
    %9 = vector.broadcast %7 : vector<1x128xf32> to vector<4x128xf32>
    %10 = arith.mulf %8, %9 : vector<4x128xf32>
    %11 = arith.addf %5, %10 : vector<4x128xf32>
    %12 = vector.extract_strided_slice %1 {offsets = [0, 1], sizes = [4, 1], strides = [1, 1]} : vector<4x8xf32> to vector<4x1xf32>
    %13 = vector.extract_strided_slice %0 {offsets = [1, 0], sizes = [1, 128], strides = [1, 1]} : vector<8x128xf32> to vector<1x128xf32>
    %14 = vector.broadcast %12 : vector<4x1xf32> to vector<4x128xf32>
    %15 = vector.broadcast %13 : vector<1x128xf32> to vector<4x128xf32>
    %16 = arith.mulf %14, %15 : vector<4x128xf32>
    %17 = arith.addf %11, %16 : vector<4x128xf32>
    %18 = vector.extract_strided_slice %1 {offsets = [0, 2], sizes = [4, 1], strides = [1, 1]} : vector<4x8xf32> to vector<4x1xf32>
    %19 = vector.extract_strided_slice %0 {offsets = [2, 0], sizes = [1, 128], strides = [1, 1]} : vector<8x128xf32> to vector<1x128xf32>
    %20 = vector.broadcast %18 : vector<4x1xf32> to vector<4x128xf32>
    %21 = vector.broadcast %19 : vector<1x128xf32> to vector<4x128xf32>
    %22 = arith.mulf %20, %21 : vector<4x128xf32>
    %23 = arith.addf %17, %22 : vector<4x128xf32>
    %24 = vector.extract_strided_slice %1 {offsets = [0, 3], sizes = [4, 1], strides = [1, 1]} : vector<4x8xf32> to vector<4x1xf32>
    %25 = vector.extract_strided_slice %0 {offsets = [3, 0], sizes = [1, 128], strides = [1, 1]} : vector<8x128xf32> to vector<1x128xf32>
    %26 = vector.broadcast %24 : vector<4x1xf32> to vector<4x128xf32>
    %27 = vector.broadcast %25 : vector<1x128xf32> to vector<4x128xf32>
    %28 = arith.mulf %26, %27 : vector<4x128xf32>
    %29 = arith.addf %23, %28 : vector<4x128xf32>
    %30 = vector.extract_strided_slice %1 {offsets = [0, 4], sizes = [4, 1], strides = [1, 1]} : vector<4x8xf32> to vector<4x1xf32>
    %31 = vector.extract_strided_slice %0 {offsets = [4, 0], sizes = [1, 128], strides = [1, 1]} : vector<8x128xf32> to vector<1x128xf32>
    %32 = vector.broadcast %30 : vector<4x1xf32> to vector<4x128xf32>
    %33 = vector.broadcast %31 : vector<1x128xf32> to vector<4x128xf32>
    %34 = arith.mulf %32, %33 : vector<4x128xf32>
    %35 = arith.addf %29, %34 : vector<4x128xf32>
    %36 = vector.extract_strided_slice %1 {offsets = [0, 5], sizes = [4, 1], strides = [1, 1]} : vector<4x8xf32> to vector<4x1xf32>
    %37 = vector.extract_strided_slice %0 {offsets = [5, 0], sizes = [1, 128], strides = [1, 1]} : vector<8x128xf32> to vector<1x128xf32>
    %38 = vector.broadcast %36 : vector<4x1xf32> to vector<4x128xf32>
    %39 = vector.broadcast %37 : vector<1x128xf32> to vector<4x128xf32>
    %40 = arith.mulf %38, %39 : vector<4x128xf32>
    %41 = arith.addf %35, %40 : vector<4x128xf32>
    %42 = vector.extract_strided_slice %1 {offsets = [0, 6], sizes = [4, 1], strides = [1, 1]} : vector<4x8xf32> to vector<4x1xf32>
    %43 = vector.extract_strided_slice %0 {offsets = [6, 0], sizes = [1, 128], strides = [1, 1]} : vector<8x128xf32> to vector<1x128xf32>
    %44 = vector.broadcast %42 : vector<4x1xf32> to vector<4x128xf32>
    %45 = vector.broadcast %43 : vector<1x128xf32> to vector<4x128xf32>
    %46 = arith.mulf %44, %45 : vector<4x128xf32>
    %47 = arith.addf %41, %46 : vector<4x128xf32>
    %48 = vector.extract_strided_slice %1 {offsets = [0, 7], sizes = [4, 1], strides = [1, 1]} : vector<4x8xf32> to vector<4x1xf32>
    %49 = vector.extract_strided_slice %0 {offsets = [7, 0], sizes = [1, 128], strides = [1, 1]} : vector<8x128xf32> to vector<1x128xf32>
    %50 = vector.broadcast %48 : vector<4x1xf32> to vector<4x128xf32>
    %51 = vector.broadcast %49 : vector<1x128xf32> to vector<4x128xf32>
    %52 = arith.mulf %50, %51 : vector<4x128xf32>
    %53 = arith.addf %47, %52 : vector<4x128xf32>
    %54 = math.tanh %53 : vector<4x128xf32>
    %c0_7 = arith.constant 0 : index
    %c0_8 = arith.constant 0 : index
    %55 = vector.load %arg5[%c0_7, %c0_8] : memref<2x1xf32, #tpu.memory_space<vmem>>, vector<2x1xf32>
    %56 = vector.shape_cast %55 : vector<2x1xf32> to vector<2x1xf32>
    %57 = vector.broadcast %56 : vector<2x1xf32> to vector<2x128xf32>
    %58 = vector.extract_strided_slice %2 {offsets = [0, 0], sizes = [2, 1], strides = [1, 1]} : vector<2x4xf32> to vector<2x1xf32>
    %59 = vector.extract_strided_slice %54 {offsets = [0, 0], sizes = [1, 128], strides = [1, 1]} : vector<4x128xf32> to vector<1x128xf32>
    %60 = vector.broadcast %58 : vector<2x1xf32> to vector<2x128xf32>
    %61 = vector.broadcast %59 : vector<1x128xf32> to vector<2x128xf32>
    %62 = arith.mulf %60, %61 : vector<2x128xf32>
    %63 = arith.addf %57, %62 : vector<2x128xf32>
    %64 = vector.extract_strided_slice %2 {offsets = [0, 1], sizes = [2, 1], strides = [1, 1]} : vector<2x4xf32> to vector<2x1xf32>
    %65 = vector.extract_strided_slice %54 {offsets = [1, 0], sizes = [1, 128], strides = [1, 1]} : vector<4x128xf32> to vector<1x128xf32>
    %66 = vector.broadcast %64 : vector<2x1xf32> to vector<2x128xf32>
    %67 = vector.broadcast %65 : vector<1x128xf32> to vector<2x128xf32>
    %68 = arith.mulf %66, %67 : vector<2x128xf32>
    %69 = arith.addf %63, %68 : vector<2x128xf32>
    %70 = vector.extract_strided_slice %2 {offsets = [0, 2], sizes = [2, 1], strides = [1, 1]} : vector<2x4xf32> to vector<2x1xf32>
    %71 = vector.extract_strided_slice %54 {offsets = [2, 0], sizes = [1, 128], strides = [1, 1]} : vector<4x128xf32> to vector<1x128xf32>
    %72 = vector.broadcast %70 : vector<2x1xf32> to vector<2x128xf32>
    %73 = vector.broadcast %71 : vector<1x128xf32> to vector<2x128xf32>
    %74 = arith.mulf %72, %73 : vector<2x128xf32>
    %75 = arith.addf %69, %74 : vector<2x128xf32>
    %76 = vector.extract_strided_slice %2 {offsets = [0, 3], sizes = [2, 1], strides = [1, 1]} : vector<2x4xf32> to vector<2x1xf32>
    %77 = vector.extract_strided_slice %54 {offsets = [3, 0], sizes = [1, 128], strides = [1, 1]} : vector<4x128xf32> to vector<1x128xf32>
    %78 = vector.broadcast %76 : vector<2x1xf32> to vector<2x128xf32>
    %79 = vector.broadcast %77 : vector<1x128xf32> to vector<2x128xf32>
    %80 = arith.mulf %78, %79 : vector<2x128xf32>
    %81 = arith.addf %75, %80 : vector<2x128xf32>
    %82 = math.tanh %81 : vector<2x128xf32>
    %c0_9 = arith.constant 0 : index
    %c0_10 = arith.constant 0 : index
    %83 = vector.load %arg6[%c0_9, %c0_10] : memref<2x128xf32, #tpu.memory_space<vmem>>, vector<2x128xf32>
    tpu.vector_store %arg6[%c0_9, %c0_10], %82 {strides = array<i32>} : memref<2x128xf32, #tpu.memory_space<vmem>>, vector<2x128xf32>,
    return
  }
  func.func @transform_0(%arg0: i32) -> (i32, i32) {
    %c0_i32 = arith.constant 0 : i32
    %c0_i32_0 = arith.constant 0 : i32
    return %c0_i32, %arg0 : i32, i32
  }
  func.func @transform_1(%arg0: i32) -> (i32, i32) {
    %c0_i32 = arith.constant 0 : i32
    %c0_i32_0 = arith.constant 0 : i32
    %c0_i32_1 = arith.constant 0 : i32
    return %c0_i32, %c0_i32_0 : i32, i32
  }
  func.func @transform_2(%arg0: i32) -> (i32, i32) {
    %c0_i32 = arith.constant 0 : i32
    %c0_i32_0 = arith.constant 0 : i32
    %c0_i32_1 = arith.constant 0 : i32
    return %c0_i32, %c0_i32_0 : i32, i32
  }
  func.func @transform_3(%arg0: i32) -> (i32, i32) {
    %c0_i32 = arith.constant 0 : i32
    %c0_i32_0 = arith.constant 0 : i32
    %c0_i32_1 = arith.constant 0 : i32
    return %c0_i32, %c0_i32_0 : i32, i32
  }
  func.func @transform_4(%arg0: i32) -> (i32, i32) {
    %c0_i32 = arith.constant 0 : i32
    %c0_i32_0 = arith.constant 0 : i32
    %c0_i32_1 = arith.constant 0 : i32
    return %c0_i32, %c0_i32_0 : i32, i32
  }
  func.func @transform_5(%arg0: i32) -> (i32, i32) {
    %c0_i32 = arith.constant 0 : i32
    %c0_i32_0 = arith.constant 0 : i32
    return %c0_i32, %arg0 : i32, i32
  }
}

</mosaic_0001>

<bundles_post_ra>
// kernel: tpu_custom_call.1
= control target key start
LH: loop header
LB: loop body
LE: loop exit
PB: predicated region body
PF: predicated region fallthrough
CT: control target
= control target key end

     0   :  { %v225_v1 = vmov 1   ;;  %v226_v2 = vmov 0   ;;  %s291_s0 = inlined_call_operand.vmem [shape: f32[8,128], index: 0, kind: input, shape index: {}]   ;;  %s292_s1 = inlined_call_operand.vmem [shape: f32[4,8], index: 1, kind: input, shape index: {}]   ;;  %s293_s2 = inlined_call_operand.vmem [shape: f32[4,1], index: 2, kind: input, shape index: {}]   ;;  %s294_s3 = inlined_call_operand.vmem [shape: f32[2,4], index: 3, kind: input, shape index: {}]   ;;  %s295_s4 = inlined_call_operand.vmem [shape: f32[2,1], index: 4, kind: input, shape index: {}]   ;;  %s296_s5 = inlined_call_operand.hbm [shape: f32[2,128], index: 5, kind: output, shape index: {}]  }
   0x1   :  { %v22_v0 = vld [vmem:[%s292_s1] sm:$0xf]  ;;  %185 = vset.pattern.permute.xlu1 %v225_v1  ;;  %184 = vset.pattern.permute.xlu0 %v226_v2 }
   0x2   :  { %42 = vperm.xlu1 %185, %v22_v0   ;;  %32 = vperm.xlu0 %184, %v22_v0   ;;  %v24_v3 = vld [vmem:[%s293_s2] sm:$0xf] }
   0x3   :  { %10 = vsyncpa [#allocation3], 0  ;;  %v227_v4 = vmov 2   ;;  %v228_v5 = vmov 3   ;;  %v229_v6 = vmov 4   ;;  %v230_v7 = vmov 6  }
   0x4   :  { %v231_v8 = vmov 5   ;;  %v112_v9 = vld [vmem:[%s295_s4] sm:$0x3]  ;;  %v232_v10 = vmov 7   ;;  %v35_v12 = vlaneseq }
   0x5   :  { %v23_v11 = vld [vmem:[%s294_s3] sm:$0x3] }
   0x6   :  { %186 = vset.pattern.permute.xlu1 %v227_v4  ;;  %27 = vperm.xlu0 %184, %v24_v3   ;;  %v36_v13 = vshrl.u32 %v35_v12, 7  ;;  %v21_v15 = vld [vmem:[%s291_s0] sm:$0xff]  ;;  %s233_s0 = smov [#allocation2]  }
   0x7   :  { %52 = vperm.xlu1 %186, %v22_v0   ;;  %s167_s3 = sshll.u32 %s233_s0, 4  ;;  %s168_s3 = int_to_ptr.vmem [resolvable:$true] %s167_s3 }
   0x8   :  { %v37_v14 = vsub.s32 0, %v36_v13  ;;  %v47_v16 = vsub.s32 1, %v36_v13  ;;  %v57_v18 = vsub.s32 2, %v36_v13  ;;  %v67_v24 = vsub.s32 3, %v36_v13  ;;  %s201_s25 = scalar_lea.vmem %s168_s3, 32  ;;  %p206_p1 = scmp.lt.s32.totalorder %s168_s3, %s168_s3 }
   0x9   :  { %v77_v26 = vsub.s32 4, %v36_v13  ;;  %v87_v34 = vsub.s32 5, %v36_v13  ;;  %v97_v35 = vsub.s32 6, %v36_v13  ;;  %v107_v44 = vsub.s32 7, %v36_v13  ;;  %p202_p0 = scmp.ne.s32.totalorder %s168_s3, %s201_s25  ;;  %p207_p2 = scmp.lt.s32.totalorder %s201_s25, %s201_s25 }
   0xa   :  { %187 = vset.pattern.permute.xlu0 %v228_v5  ;;  %v38_v17 = vrot.slane %v21_v15, %v37_v14  ;;  %v48_v21 = vrot.slane %v21_v15, %v47_v16  ;;  %v58_v23 = vrot.slane %v21_v15, %v57_v18  ;;  %v68_v31 = vrot.slane %v21_v15, %v67_v24 }
   0xb   :  { %188 = vset.pattern.permute.xlu1 %v229_v6  ;;  %62 = vperm.xlu0 %187, %v22_v0   ;;  %v78_v33 = vrot.slane %v21_v15, %v77_v26  ;;  %v88_v42 = vrot.slane %v21_v15, %v87_v34  ;;  %v98_v43 = vrot.slane %v21_v15, %v97_v35  ;;  %p208_p3 = por %p207_p2, %p206_p1 }
   0xc   :  { %72 = vperm.xlu1 %188, %v22_v0   ;;  %v108_v50 = vrot.slane %v21_v15, %v107_v44 }
   0xd   :  { %p209_p4 = pnand %p208_p3, %p202_p0 }
   0xf   :  { %190 = vset.pattern.permute.xlu0 %v230_v7 }
  0x10   :  { %189 = vset.pattern.permute.xlu1 %v231_v8  ;;  %92 = vperm.xlu0 %190, %v22_v0  }
  0x11   :  { %82 = vperm.xlu1 %189, %v22_v0  }
  0x14   :  { %193 = vset.pattern.permute.xlu0 %v226_v2 }
  0x15   :  { %191 = vset.pattern.permute.xlu1 %v232_v10  ;;  %115 = vperm.xlu0 %193, %v112_v9  }
  0x16   :  { %102 = vperm.xlu1 %191, %v22_v0  }
  0x19   :  { %196 = vset.pattern.permute.xlu0 %v228_v5 }
  0x1a   :  { %192 = vset.pattern.permute.xlu1 %v226_v2  ;;  %150 = vperm.xlu0 %196, %v23_v11  }
  0x1b   :  { %120 = vperm.xlu1 %192, %v23_v11  }
  0x1f   :  { %194 = vset.pattern.permute.xlu1 %v225_v1 }
  0x20   :  { %130 = vperm.xlu1 %194, %v23_v11  }
  0x24   :  { %195 = vset.pattern.permute.xlu1 %v227_v4 }
  0x25   :  { %140 = vperm.xlu1 %195, %v23_v11  }
  0x81   :  { %v43_v19 = vpop.permute.xlu1 %42  ;;  %v33_v20 = vpop.permute.xlu0 %32 }
  0x82   :  { %v39_v22 = vmul.f32 %v38_v17, %v33_v20  ;;  %v49_v27 = vmul.f32 %v48_v21, %v43_v19 }
  0x85   :  { %v28_v25 = vpop.permute.xlu0 %27 }
  0x86   :  { %v40_v28 = vadd.f32 %v39_v22, %v28_v25  ;;  %v53_v29 = vpop.permute.xlu1 %52 }
  0x87   :  { %v59_v30 = vmul.f32 %v58_v23, %v53_v29 }
  0x88   :  { %v50_v32 = vadd.f32 %v49_v27, %v40_v28 }
  0x8a   :  { %v60_v36 = vadd.f32 %v59_v30, %v50_v32  ;;  %v63_v37 = vpop.permute.xlu0 %62 }
  0x8b   :  { %v69_v38 = vmul.f32 %v68_v31, %v63_v37  ;;  %v73_v39 = vpop.permute.xlu1 %72 }
  0x8c   :  { %v79_v41 = vmul.f32 %v78_v33, %v73_v39 }
  0x8d   :  { %v70_v40 = vadd.f32 %v69_v38, %v60_v36 }
  0x8f   :  { %v93_v45 = vpop.permute.xlu0 %92  ;;  %v80_v47 = vadd.f32 %v79_v41, %v70_v40 }
  0x90   :  { %v83_v46 = vpop.permute.xlu1 %82  ;;  %v99_v49 = vmul.f32 %v98_v43, %v93_v45 }
  0x91   :  { %v89_v48 = vmul.f32 %v88_v42, %v83_v46 }
  0x93   :  { %v90_v51 = vadd.f32 %v89_v48, %v80_v47 }
  0x94   :  { %v116_v59 = vpop.permute.xlu0 %115 }
  0x95   :  { %v100_v52 = vadd.f32 %v99_v49, %v90_v51  ;;  %v103_v53 = vpop.permute.xlu1 %102 }
  0x96   :  { %v109_v54 = vmul.f32 %v108_v50, %v103_v53 }
  0x98   :  { %v110_v55 = vadd.f32 %v109_v54, %v100_v52 }
  0x99   :  { %v151_v4 = vpop.permute.xlu0 %150 }
  0x9a   :  { %197 = vtanh.f32 %v110_v55  ;;  %v121_v56 = vpop.permute.xlu1 %120 }
  0x9f   :  { %v131_v57 = vpop.permute.xlu1 %130 }
  0xa4   :  { %v198_v58 = vpop.eup %197  ;;  %v141_v0 = vpop.permute.xlu1 %140 }
  0xa5   :  { %v126_v60 = vrot.slane %v198_v58, %v37_v14  ;;  %v136_v61 = vrot.slane %v198_v58, %v47_v16  ;;  %v146_v63 = vrot.slane %v198_v58, %v57_v18  ;;  %v156_v3 = vrot.slane %v198_v58, %v67_v24 }
  0xa7   :  { %v127_v62 = vmul.f32 %v126_v60, %v121_v56  ;;  %v137_v1 = vmul.f32 %v136_v61, %v131_v57  ;;  %v147_v6 = vmul.f32 %v146_v63, %v141_v0  ;;  %v157_v8 = vmul.f32 %v156_v3, %v151_v4 }
  0xa9   :  { %v128_v2 = vadd.f32 %v127_v62, %v116_v59 }
  0xab   :  { %v138_v5 = vadd.f32 %v137_v1, %v128_v2 }
  0xad   :  { %v148_v7 = vadd.f32 %v147_v6, %v138_v5 }
  0xaf   :  { %v158_v9 = vadd.f32 %v157_v8, %v148_v7 }
  0xb1   :  { %199 = vtanh.f32 %v158_v9 }
  0xbb   :  { %v200_v10 = vpop.eup %199 }
  0xbc   :  { %160 = vst [vmem:[#allocation2] sm:$0x3] %v200_v10 }
  0xbd   :  { %212 = shalt.err (!%p209_p4)
}
  0xbe   :  { %s213_s28 = scalar_lea.hbm %s296_s5, 32 }
  0xbf   :  { %p214_p5 = scmp.ne.s32.totalorder %s296_s5, %s213_s28  ;;  %p217_p6 = scmp.lt.u32.totalorder %s213_s28, %s296_s5 }
  0xc1   :  { %p219_p7 = pnand %p217_p6, %p214_p5 }
  0xc3   :  { %222 = shalt.err (!%p219_p7)
}
  0xc4   :  { %170 = dma.vmem_to_hbm [thread:$0]  %s168_s3, 32, %s296_s5, [#allocation3]  }
  0xc5   :  { %223 = dma.done.wait [#allocation3], 32  }
  0xc6   :  { %224 = vsyncadd [#allocation3], 4294967264 }
  0xc7   :  { %174 = vsyncpa [#allocation3], 1 }

</bundles_post_ra>
